<compile_context>
chip_gen: v7x
topology: tpu7x:2x2x1
jax: 0.10.0
libtpu: 0.0.40
codegen_flags: <defaults>
</compile_context>

<pallas_src>
import jax
import jax.numpy as jnp
from jax.experimental import pallas as pl
from jax.experimental.pallas import tpu as pltpu


def sentiment_lstm_kernel(ids_ref, emb_ref, wih0_ref, whh0_ref, wcat_ref, b_ref,
                          fcw_ref, fcb_ref, out_ref, xproj_ref):
    # ids_ref  : (T*Bblk, 1)     int32     per-block time-major token ids (row = t*Bblk + b)
    # emb_ref  : (Vpad, E)       float32   embedding table (vocab padded to 128 lanes)
    # wih0_ref : (E, 4H)         bfloat16  layer-0 input->gates, pre-transposed
    # whh0_ref : (H, 4H)         bfloat16  layer-0 hidden->gates, pre-transposed
    # wcat_ref : (max(L-1,1), 2H, 4H) bf16 layers>0: stacked [W_ih ; W_hh]
    # b_ref    : (L, 1, 4H)      float32   b_ih + b_hh per layer
    # fcw_ref  : (H, 128)        bfloat16  fc weight, zero-padded lanes beyond O
    # fcb_ref  : (1, 128)        float32   fc bias, -1e30 in padded lanes
    # out_ref  : (Bblk, 128)     float32   log-probabilities (real lanes [:O])
    # xproj_ref: (T*Bblk, 4H)    float32   VMEM scratch: hoisted layer-0 x-projection
    TB = ids_ref.shape[0]
    V = emb_ref.shape[0]
    H = whh0_ref.shape[0]
    L = b_ref.shape[0]
    B = out_ref.shape[0]
    T = TB // B

    # ---- fused embedding gather (one-hot matmul; vocab is tiny here) --------
    ids = ids_ref[...]                                               # (TB, 1)
    vocab_iota = jax.lax.broadcasted_iota(jnp.int32, (TB, V), 1)
    onehot = (vocab_iota == ids).astype(jnp.float32)                 # (TB, V)
    x0 = jnp.dot(onehot, emb_ref[...],
                 preferred_element_type=jnp.float32)                 # (TB, E)

    # ---- hoisted layer-0 input projection over ALL timesteps (one MXU op) ---
    xproj_ref[...] = (jnp.dot(x0.astype(jnp.bfloat16), wih0_ref[...],
                              preferred_element_type=jnp.float32) + b_ref[0])

    # lane mask selecting the g (cell-candidate) gate block inside (B, 4H)
    lane = jax.lax.broadcasted_iota(jnp.int32, (B, 4 * H), 1)
    g_mask = (lane >= 2 * H) & (lane < 3 * H)

    def lstm_cell(gates, c_prev):
        # Single EUP pass over the 128-lane gates tile: tanh(x) = 2*sigmoid(2x)-1.
        pre = jnp.where(g_mask, 2.0 * gates, gates)
        s = jax.nn.sigmoid(pre)
        acts = jnp.where(g_mask, 2.0 * s - 1.0, s)
        i_g = acts[:, 0 * H:1 * H]
        f_g = acts[:, 1 * H:2 * H]
        g_g = acts[:, 2 * H:3 * H]
        o_g = acts[:, 3 * H:4 * H]
        c_new = f_g * c_prev + i_g * g_g
        h_new = o_g * jnp.tanh(c_new)
        return h_new, c_new

    zeros = jnp.zeros((B, H), jnp.float32)

    # ---- wavefront-fused recurrence: layer l handles timestep t = s - l ------
    # Within one step the L cell updates only read the PREVIOUS carry, so they
    # are independent and pipeline; total dependent steps = T + L - 1.
    def wavestep(s, carry):
        hs, cs = carry
        new_hs, new_cs = [], []
        for l in range(L):                               # static: L is small
            t = s - l
            if l == 0:
                t0 = jnp.minimum(t, T - 1)               # clamp (masked when t >= T)
                off = pl.multiple_of(t0 * B, B)
                gates = (xproj_ref[pl.ds(off, B), :]
                         + jnp.dot(hs[0].astype(jnp.bfloat16), whh0_ref[...],
                                   preferred_element_type=jnp.float32))
            else:
                # fused [x_t ; h_{t-1}] x [W_ih ; W_hh]: one matmul per step
                lhs = jnp.concatenate([hs[l - 1], hs[l]],
                                      axis=1).astype(jnp.bfloat16)    # (B, 2H)
                gates = (jnp.dot(lhs, wcat_ref[l - 1],
                                 preferred_element_type=jnp.float32) + b_ref[l])
            h_new, c_new = lstm_cell(gates, cs[l])
            active = jnp.logical_and(t >= 0, t < T)
            new_hs.append(jnp.where(active, h_new, hs[l]))
            new_cs.append(jnp.where(active, c_new, cs[l]))
        return tuple(new_hs), tuple(new_cs)

    hs, _ = jax.lax.fori_loop(0, T + L - 1, wavestep,
                              (tuple([zeros] * L), tuple([zeros] * L)))
    h_last = hs[L - 1]

    # Dropout: inference mode (identity).
    # fc + log_softmax on the last hidden state only (row-wise ops, so identical
    # to PyTorch's apply-to-all-then-slice-last). Padded lanes carry -1e30 bias
    # so they contribute exp(...) == 0 to the softmax denominator.
    logits = (jnp.dot(h_last.astype(jnp.bfloat16), fcw_ref[...],
                      preferred_element_type=jnp.float32)
              + fcb_ref[...])                                        # (B, 128)
    m = jnp.max(logits, axis=-1, keepdims=True)
    z = logits - m
    lse = jnp.log(jnp.sum(jnp.exp(z), axis=-1, keepdims=True))
    out_ref[...] = z - lse                                           # lane-dense store


def sentiment_rnn_forward(x_ids, params):
    B, T = x_ids.shape
    emb = params["emb"]
    V, E = emb.shape
    L = params["w_ih"].shape[0]
    H = params["w_hh"].shape[1]
    O = params["fc_w"].shape[1]

    # Batch split into sublane-aligned blocks of 8; grid axis over blocks is
    # marked "parallel" so v7x's two TensorCores each take half the batch.
    B_BLK = 8
    B_pad = ((B + B_BLK - 1) // B_BLK) * B_BLK
    NB = B_pad // B_BLK
    x_pad = jnp.pad(x_ids, ((0, B_pad - B), (0, 0))).astype(jnp.int32)   # (B_pad, T)

    # Per-block time-major flatten: row t*B_BLK + j (within block nb) holds the
    # token of batch element nb*B_BLK + j at timestep t.
    ids = (x_pad.reshape(NB, B_BLK, T)
                .transpose(0, 2, 1)
                .reshape(NB * T * B_BLK, 1))

    # Pad vocab (one-hot lane dim) to a multiple of 128.
    V_pad = ((V + 127) // 128) * 128
    emb_p = jnp.zeros((V_pad, E), jnp.float32).at[:V, :].set(emb)

    # Layer-0 weights kept separate (its input projection is hoisted over all
    # timesteps); layers > 0 get a fused [W_ih ; W_hh] (2H, 4H) operand.
    wih0 = params["w_ih"][0].astype(jnp.bfloat16)                    # (E, 4H)
    whh0 = params["w_hh"][0].astype(jnp.bfloat16)                    # (H, 4H)
    if L > 1:
        wcat = jnp.concatenate([params["w_ih"][1:], params["w_hh"][1:]],
                               axis=1).astype(jnp.bfloat16)          # (L-1, 2H, 4H)
    else:
        wcat = jnp.zeros((1, 2 * H, 4 * H), jnp.bfloat16)            # unused

    # Lane-dense FC: pad output dim to 128; padded bias lanes get -1e30 so the
    # log_softmax over the padded tile matches the unpadded result exactly.
    O_pad = 128
    fc_w = jnp.zeros((H, O_pad), jnp.bfloat16).at[:, :O].set(
        params["fc_w"].astype(jnp.bfloat16))
    fc_b = jnp.full((1, O_pad), -1e30, jnp.float32).at[:, :O].set(
        params["fc_b"].reshape(1, O))

    TB = T * B_BLK
    whole_vmem = pl.BlockSpec(memory_space=pltpu.MemorySpace.VMEM)
    out = pl.pallas_call(
        sentiment_lstm_kernel,
        out_shape=jax.ShapeDtypeStruct((B_pad, O_pad), jnp.float32),
        grid=(NB,),
        in_specs=[
            pl.BlockSpec((TB, 1), lambda nb: (nb, 0)),   # per-block ids
            whole_vmem,                                  # emb
            whole_vmem,                                  # W_ih layer 0
            whole_vmem,                                  # W_hh layer 0
            whole_vmem,                                  # fused [W_ih;W_hh] layers > 0
            whole_vmem,                                  # biases
            whole_vmem,                                  # fc weight
            whole_vmem,                                  # fc bias
        ],
        out_specs=pl.BlockSpec((B_BLK, O_pad), lambda nb: (nb, 0)),
        scratch_shapes=[pltpu.VMEM((TB, 4 * H), jnp.float32)],   # hoisted x-proj
        compiler_params=pltpu.CompilerParams(
            dimension_semantics=("parallel",)),
    )(ids, emb_p, wih0, whh0, wcat, params["b"], fc_w, fc_b)
    return out[:B, :O]


def init_params(key, num_layers, vocab_size, hidden_dim, embedding_dim, output_dim):
    assert embedding_dim == hidden_dim, "weights stacked per layer; E must equal H"
    k = 1.0 / jnp.sqrt(hidden_dim)
    keys = jax.random.split(key, 6)
    emb = jax.random.normal(keys[0], (vocab_size, embedding_dim), jnp.float32)
    # Stacked per-layer LSTM weights (pre-transposed for row-major matmuls),
    # gate order (i, f, g, o) as in PyTorch.
    w_ih = jax.random.uniform(keys[1], (num_layers, embedding_dim, 4 * hidden_dim),
                              jnp.float32, -k, k)
    w_hh = jax.random.uniform(keys[2], (num_layers, hidden_dim, 4 * hidden_dim),
                              jnp.float32, -k, k)
    b_ih = jax.random.uniform(keys[3], (num_layers, 1, 4 * hidden_dim),
                              jnp.float32, -k, k)
    b_hh = jax.random.uniform(keys[4], (num_layers, 1, 4 * hidden_dim),
                              jnp.float32, -k, k)
    fc_w = jax.random.uniform(keys[5], (hidden_dim, output_dim), jnp.float32, -k, k)
    fc_b = jnp.zeros((1, output_dim), jnp.float32)
    return {"emb": emb, "w_ih": w_ih, "w_hh": w_hh, "b": b_ih + b_hh,
            "fc_w": fc_w, "fc_b": fc_b}


if __name__ == "__main__":
    num_layers = 2
    vocab_size = 50
    hidden_dim = 32
    embedding_dim = 32
    output_dim = 3
    B, T = 2, 8

    key = jax.random.PRNGKey(0)
    k_par, k_ids = jax.random.split(key)
    params = init_params(k_par, num_layers, vocab_size, hidden_dim,
                         embedding_dim, output_dim)
    x_ids = jax.random.randint(k_ids, (B, T), 0, vocab_size, dtype=jnp.int32)

    out = jax.jit(sentiment_rnn_forward)(x_ids, params)
    out = jax.block_until_ready(out)
    assert out.shape == (B, output_dim)
    # log-softmax rows must sum (in prob space) to ~1
    assert bool(jnp.allclose(jnp.sum(jnp.exp(out), axis=-1), 1.0, atol=1e-3))
    print("KERNEL_OK")
</pallas_src>

<mosaic_0001>
module attributes {stable_mosaic.version = 11 : i64} {
  func.func @sentiment_lstm_kernel(%arg0: i32, %arg1: memref<64x1xi32, #tpu.memory_space<vmem>>, %arg2: memref<128x32xf32, #tpu.memory_space<vmem>>, %arg3: memref<32x128xbf16, #tpu.memory_space<vmem>>, %arg4: memref<32x128xbf16, #tpu.memory_space<vmem>>, %arg5: memref<1x64x128xbf16, #tpu.memory_space<vmem>>, %arg6: memref<2x1x128xf32, #tpu.memory_space<vmem>>, %arg7: memref<32x128xbf16, #tpu.memory_space<vmem>>, %arg8: memref<1x128xf32, #tpu.memory_space<vmem>>, %arg9: memref<8x128xf32, #tpu.memory_space<vmem>>, %arg10: memref<64x128xf32, #tpu.memory_space<vmem>>) attributes {dimension_semantics = [#tpu.dimension_semantics<parallel>], iteration_bounds = array<i64: 1>, scalar_prefetch = 0 : i64, scratch_operands = 1 : i64, tpu.core_type = #tpu.core_type<tc>, window_params = [{transform_indices = @transform_0, window_bounds = array<i64: 64, 1>}, {pipeline_mode = #tpu.pipeline_mode<synchronous>, transform_indices = @transform_1, window_bounds = array<i64: 128, 32>}, {pipeline_mode = #tpu.pipeline_mode<synchronous>, transform_indices = @transform_2, window_bounds = array<i64: 32, 128>}, {pipeline_mode = #tpu.pipeline_mode<synchronous>, transform_indices = @transform_3, window_bounds = array<i64: 32, 128>}, {pipeline_mode = #tpu.pipeline_mode<synchronous>, transform_indices = @transform_4, window_bounds = array<i64: 1, 64, 128>}, {pipeline_mode = #tpu.pipeline_mode<synchronous>, transform_indices = @transform_5, window_bounds = array<i64: 2, 1, 128>}, {pipeline_mode = #tpu.pipeline_mode<synchronous>, transform_indices = @transform_6, window_bounds = array<i64: 32, 128>}, {pipeline_mode = #tpu.pipeline_mode<synchronous>, transform_indices = @transform_7, window_bounds = array<i64: 1, 128>}, {transform_indices = @transform_8, window_bounds = array<i64: 8, 128>}]} {
    %c0 = arith.constant 0 : index
    %c0_0 = arith.constant 0 : index
    %0 = vector.load %arg1[%c0, %c0_0] : memref<64x1xi32, #tpu.memory_space<vmem>>, vector<64x1xi32>
    %1 = tpu.iota {dimensions = array<i32: 1>} : vector<64x128xi32>
    %2 = vector.broadcast %0 : vector<64x1xi32> to vector<64x128xi32>
    %3 = arith.cmpi eq, %1, %2 : vector<64x128xi32>
    %4 = arith.extui %3 : vector<64x128xi1> to vector<64x128xi32>
    %5 = arith.sitofp %4 : vector<64x128xi32> to vector<64x128xf32>
    %c0_1 = arith.constant 0 : index
    %c0_2 = arith.constant 0 : index
    %6 = vector.load %arg2[%c0_1, %c0_2] : memref<128x32xf32, #tpu.memory_space<vmem>>, vector<128x32xf32>
    %cst = arith.constant dense<0.000000e+00> : vector<64x32xf32>
    %7 = tpu.matmul %5, %6, %cst {dimension_numbers = #tpu.dot_dimension_numbers<[1], [0], [0], [1], [0, 0, 1, 1], [], []>} : vector<64x128xf32>, vector<128x32xf32>, vector<64x32xf32> -> vector<64x32xf32>
    %8 = arith.truncf %7 : vector<64x32xf32> to vector<64x32xbf16>
    %c0_3 = arith.constant 0 : index
    %c0_4 = arith.constant 0 : index
    %9 = vector.load %arg3[%c0_3, %c0_4] : memref<32x128xbf16, #tpu.memory_space<vmem>>, vector<32x128xbf16>
    %cst_5 = arith.constant dense<0.000000e+00> : vector<64x128xf32>
    %10 = tpu.matmul %8, %9, %cst_5 {dimension_numbers = #tpu.dot_dimension_numbers<[1], [0], [0], [1], [0, 0, 1, 1], [], []>} : vector<64x32xbf16>, vector<32x128xbf16>, vector<64x128xf32> -> vector<64x128xf32>
    %c0_6 = arith.constant 0 : index
    %c0_7 = arith.constant 0 : index
    %c0_8 = arith.constant 0 : index
    %11 = vector.load %arg6[%c0_6, %c0_7, %c0_8] : memref<2x1x128xf32, #tpu.memory_space<vmem>>, vector<1x1x128xf32>
    %12 = vector.shape_cast %11 : vector<1x1x128xf32> to vector<1x128xf32>
    %13 = vector.broadcast %12 : vector<1x128xf32> to vector<64x128xf32>
    %14 = arith.addf %10, %13 : vector<64x128xf32>
    %c0_9 = arith.constant 0 : index
    %c0_10 = arith.constant 0 : index
    %15 = vector.load %arg10[%c0_9, %c0_10] : memref<64x128xf32, #tpu.memory_space<vmem>>, vector<64x128xf32>
    tpu.vector_store %arg10[%c0_9, %c0_10], %14 {strides = array<i32>} : memref<64x128xf32, #tpu.memory_space<vmem>>, vector<64x128xf32>,
    %16 = tpu.iota {dimensions = array<i32: 1>} : vector<8x128xi32>
    %c64_i32 = arith.constant 64 : i32
    %17 = vector.broadcast %c64_i32 : i32 to vector<8x128xi32>
    %18 = arith.cmpi sge, %16, %17 : vector<8x128xi32>
    %c96_i32 = arith.constant 96 : i32
    %19 = vector.broadcast %c96_i32 : i32 to vector<8x128xi32>
    %20 = arith.cmpi slt, %16, %19 : vector<8x128xi32>
    %21 = arith.andi %18, %20 : vector<8x128xi1>
    %cst_11 = arith.constant 0.000000e+00 : f32
    %22 = vector.broadcast %cst_11 : f32 to vector<8x32xf32>
    %c0_i32 = arith.constant 0 : i32
    %c9_i32 = arith.constant 9 : i32
    %23 = arith.addi %c0_i32, %c9_i32 : i32
    %c1_i32 = arith.constant 1 : i32
    %24:4 = scf.for %arg11 = %c0_i32 to %23 step %c1_i32 iter_args(%arg12 = %22, %arg13 = %22, %arg14 = %22, %arg15 = %22) -> (vector<8x32xf32>, vector<8x32xf32>, vector<8x32xf32>, vector<8x32xf32>)  : i32 {
      %c0_i32_22 = arith.constant 0 : i32
      %42 = arith.subi %arg11, %c0_i32_22 : i32
      %c7_i32 = arith.constant 7 : i32
      %43 = arith.minsi %42, %c7_i32 : i32
      %c8_i32 = arith.constant 8 : i32
      %44 = arith.muli %43, %c8_i32 : i32
      %45 = tpu.assume_multiple %44, 8 : i32
      %46 = arith.index_cast %45 : i32 to index
      %c0_23 = arith.constant 0 : index
      %47 = vector.load %arg10[%46, %c0_23] : memref<64x128xf32, #tpu.memory_space<vmem>>, vector<8x128xf32>
      %48 = arith.truncf %arg12 : vector<8x32xf32> to vector<8x32xbf16>
      %c0_24 = arith.constant 0 : index
      %c0_25 = arith.constant 0 : index
      %49 = vector.load %arg4[%c0_24, %c0_25] : memref<32x128xbf16, #tpu.memory_space<vmem>>, vector<32x128xbf16>
      %cst_26 = arith.constant dense<0.000000e+00> : vector<8x128xf32>
      %50 = tpu.matmul %48, %49, %cst_26 {dimension_numbers = #tpu.dot_dimension_numbers<[1], [0], [0], [1], [0, 0, 1, 1], [], []>} : vector<8x32xbf16>, vector<32x128xbf16>, vector<8x128xf32> -> vector<8x128xf32>
      %51 = arith.addf %47, %50 : vector<8x128xf32>
      %cst_27 = arith.constant 2.000000e+00 : f32
      %52 = vector.broadcast %cst_27 : f32 to vector<8x128xf32>
      %53 = arith.mulf %52, %51 : vector<8x128xf32>
      %54 = arith.select %21, %53, %51 : vector<8x128xi1>, vector<8x128xf32>
      %55 = arith.negf %54 : vector<8x128xf32>
      %56 = math.exp %55 : vector<8x128xf32>
      %cst_28 = arith.constant 1.000000e+00 : f32
      %57 = vector.broadcast %cst_28 : f32 to vector<8x128xf32>
      %58 = arith.addf %57, %56 : vector<8x128xf32>
      %59 = arith.divf %57, %58 : vector<8x128xf32>
      %cst_29 = arith.constant 2.000000e+00 : f32
      %60 = vector.broadcast %cst_29 : f32 to vector<8x128xf32>
      %61 = arith.mulf %60, %59 : vector<8x128xf32>
      %cst_30 = arith.constant 1.000000e+00 : f32
      %62 = vector.broadcast %cst_30 : f32 to vector<8x128xf32>
      %63 = arith.subf %61, %62 : vector<8x128xf32>
      %64 = arith.select %21, %63, %59 : vector<8x128xi1>, vector<8x128xf32>
      %65 = vector.extract_strided_slice %64 {offsets = [0, 0], sizes = [8, 32], strides = [1, 1]} : vector<8x128xf32> to vector<8x32xf32>
      %66 = vector.extract_strided_slice %64 {offsets = [0, 32], sizes = [8, 32], strides = [1, 1]} : vector<8x128xf32> to vector<8x32xf32>
      %67 = vector.extract_strided_slice %64 {offsets = [0, 64], sizes = [8, 32], strides = [1, 1]} : vector<8x128xf32> to vector<8x32xf32>
      %68 = vector.extract_strided_slice %64 {offsets = [0, 96], sizes = [8, 32], strides = [1, 1]} : vector<8x128xf32> to vector<8x32xf32>
      %69 = arith.mulf %66, %arg14 : vector<8x32xf32>
      %70 = arith.mulf %65, %67 : vector<8x32xf32>
      %71 = arith.addf %69, %70 : vector<8x32xf32>
      %72 = math.tanh %71 : vector<8x32xf32>
      %73 = arith.mulf %68, %72 : vector<8x32xf32>
      %c0_i32_31 = arith.constant 0 : i32
      %74 = arith.cmpi sge, %42, %c0_i32_31 : i32
      %c8_i32_32 = arith.constant 8 : i32
      %75 = arith.cmpi slt, %42, %c8_i32_32 : i32
      %76 = arith.andi %74, %75 : i1
      %77 = arith.select %76, %73, %arg12 : vector<8x32xf32>
      %78 = arith.select %76, %71, %arg14 : vector<8x32xf32>
      %c1_i32_33 = arith.constant 1 : i32
      %79 = arith.subi %arg11, %c1_i32_33 : i32
      %80 = tpu.concatenate %arg12, %arg13 in 1 : vector<8x32xf32>, vector<8x32xf32> -> vector<8x64xf32>
      %81 = arith.truncf %80 : vector<8x64xf32> to vector<8x64xbf16>
      %c0_34 = arith.constant 0 : index
      %c0_35 = arith.constant 0 : index
      %c0_36 = arith.constant 0 : index
      %82 = vector.load %arg5[%c0_34, %c0_35, %c0_36] : memref<1x64x128xbf16, #tpu.memory_space<vmem>>, vector<1x64x128xbf16>
      %83 = vector.shape_cast %82 : vector<1x64x128xbf16> to vector<64x128xbf16>
      %cst_37 = arith.constant dense<0.000000e+00> : vector<8x128xf32>
      %84 = tpu.matmul %81, %83, %cst_37 {dimension_numbers = #tpu.dot_dimension_numbers<[1], [0], [0], [1], [0, 0, 1, 1], [], []>} : vector<8x64xbf16>, vector<64x128xbf16>, vector<8x128xf32> -> vector<8x128xf32>
      %c1 = arith.constant 1 : index
      %c0_38 = arith.constant 0 : index
      %c0_39 = arith.constant 0 : index
      %85 = vector.load %arg6[%c1, %c0_38, %c0_39] : memref<2x1x128xf32, #tpu.memory_space<vmem>>, vector<1x1x128xf32>
      %86 = vector.shape_cast %85 : vector<1x1x128xf32> to vector<1x128xf32>
      %87 = vector.broadcast %86 : vector<1x128xf32> to vector<8x128xf32>
      %88 = arith.addf %84, %87 : vector<8x128xf32>
      %cst_40 = arith.constant 2.000000e+00 : f32
      %89 = vector.broadcast %cst_40 : f32 to vector<8x128xf32>
      %90 = arith.mulf %89, %88 : vector<8x128xf32>
      %91 = arith.select %21, %90, %88 : vector<8x128xi1>, vector<8x128xf32>
      %92 = arith.negf %91 : vector<8x128xf32>
      %93 = math.exp %92 : vector<8x128xf32>
      %cst_41 = arith.constant 1.000000e+00 : f32
      %94 = vector.broadcast %cst_41 : f32 to vector<8x128xf32>
      %95 = arith.addf %94, %93 : vector<8x128xf32>
      %96 = arith.divf %94, %95 : vector<8x128xf32>
      %cst_42 = arith.constant 2.000000e+00 : f32
      %97 = vector.broadcast %cst_42 : f32 to vector<8x128xf32>
      %98 = arith.mulf %97, %96 : vector<8x128xf32>
      %cst_43 = arith.constant 1.000000e+00 : f32
      %99 = vector.broadcast %cst_43 : f32 to vector<8x128xf32>
      %100 = arith.subf %98, %99 : vector<8x128xf32>
      %101 = arith.select %21, %100, %96 : vector<8x128xi1>, vector<8x128xf32>
      %102 = vector.extract_strided_slice %101 {offsets = [0, 0], sizes = [8, 32], strides = [1, 1]} : vector<8x128xf32> to vector<8x32xf32>
      %103 = vector.extract_strided_slice %101 {offsets = [0, 32], sizes = [8, 32], strides = [1, 1]} : vector<8x128xf32> to vector<8x32xf32>
      %104 = vector.extract_strided_slice %101 {offsets = [0, 64], sizes = [8, 32], strides = [1, 1]} : vector<8x128xf32> to vector<8x32xf32>
      %105 = vector.extract_strided_slice %101 {offsets = [0, 96], sizes = [8, 32], strides = [1, 1]} : vector<8x128xf32> to vector<8x32xf32>
      %106 = arith.mulf %103, %arg15 : vector<8x32xf32>
      %107 = arith.mulf %102, %104 : vector<8x32xf32>
      %108 = arith.addf %106, %107 : vector<8x32xf32>
      %109 = math.tanh %108 : vector<8x32xf32>
      %110 = arith.mulf %105, %109 : vector<8x32xf32>
      %c0_i32_44 = arith.constant 0 : i32
      %111 = arith.cmpi sge, %79, %c0_i32_44 : i32
      %c8_i32_45 = arith.constant 8 : i32
      %112 = arith.cmpi slt, %79, %c8_i32_45 : i32
      %113 = arith.andi %111, %112 : i1
      %114 = arith.select %113, %110, %arg13 : vector<8x32xf32>
      %115 = arith.select %113, %108, %arg15 : vector<8x32xf32>
      scf.yield %77, %114, %78, %115 : vector<8x32xf32>, vector<8x32xf32>, vector<8x32xf32>, vector<8x32xf32>
    }
    %c9_i32_12 = arith.constant 9 : i32
    %25 = arith.truncf %24#1 : vector<8x32xf32> to vector<8x32xbf16>
    %c0_13 = arith.constant 0 : index
    %c0_14 = arith.constant 0 : index
    %26 = vector.load %arg7[%c0_13, %c0_14] : memref<32x128xbf16, #tpu.memory_space<vmem>>, vector<32x128xbf16>
    %cst_15 = arith.constant dense<0.000000e+00> : vector<8x128xf32>
    %27 = tpu.matmul %25, %26, %cst_15 {dimension_numbers = #tpu.dot_dimension_numbers<[1], [0], [0], [1], [0, 0, 1, 1], [], []>} : vector<8x32xbf16>, vector<32x128xbf16>, vector<8x128xf32> -> vector<8x128xf32>
    %c0_16 = arith.constant 0 : index
    %c0_17 = arith.constant 0 : index
    %28 = vector.load %arg8[%c0_16, %c0_17] : memref<1x128xf32, #tpu.memory_space<vmem>>, vector<1x128xf32>
    %29 = vector.broadcast %28 : vector<1x128xf32> to vector<8x128xf32>
    %30 = arith.addf %27, %29 : vector<8x128xf32>
    %cst_18 = arith.constant dense<0xFF800000> : vector<8xf32>
    %31 = vector.multi_reduction <maximumf>, %30, %cst_18 [1] : vector<8x128xf32> to vector<8xf32>
    %32 = vector.shape_cast %31 : vector<8xf32> to vector<8x1xf32>
    %33 = vector.broadcast %32 : vector<8x1xf32> to vector<8x128xf32>
    %34 = arith.subf %30, %33 : vector<8x128xf32>
    %35 = math.exp %34 : vector<8x128xf32>
    %cst_19 = arith.constant dense<0.000000e+00> : vector<8xf32>
    %36 = vector.multi_reduction <add>, %35, %cst_19 [1] : vector<8x128xf32> to vector<8xf32>
    %37 = vector.shape_cast %36 : vector<8xf32> to vector<8x1xf32>
    %38 = math.log %37 : vector<8x1xf32>
    %39 = vector.broadcast %38 : vector<8x1xf32> to vector<8x128xf32>
    %40 = arith.subf %34, %39 : vector<8x128xf32>
    %c0_20 = arith.constant 0 : index
    %c0_21 = arith.constant 0 : index
    %41 = vector.load %arg9[%c0_20, %c0_21] : memref<8x128xf32, #tpu.memory_space<vmem>>, vector<8x128xf32>
    tpu.vector_store %arg9[%c0_20, %c0_21], %40 {strides = array<i32>} : memref<8x128xf32, #tpu.memory_space<vmem>>, vector<8x128xf32>,
    return
  }
  func.func @transform_0(%arg0: i32) -> (i32, i32) {
    %c0_i32 = arith.constant 0 : i32
    %c0_i32_0 = arith.constant 0 : i32
    return %arg0, %c0_i32 : i32, i32
  }
  func.func @transform_1(%arg0: i32) -> (i32, i32) {
    %c0_i32 = arith.constant 0 : i32
    %c0_i32_0 = arith.constant 0 : i32
    %c0_i32_1 = arith.constant 0 : i32
    return %c0_i32, %c0_i32_0 : i32, i32
  }
  func.func @transform_2(%arg0: i32) -> (i32, i32) {
    %c0_i32 = arith.constant 0 : i32
    %c0_i32_0 = arith.constant 0 : i32
    %c0_i32_1 = arith.constant 0 : i32
    return %c0_i32, %c0_i32_0 : i32, i32
  }
  func.func @transform_3(%arg0: i32) -> (i32, i32) {
    %c0_i32 = arith.constant 0 : i32
    %c0_i32_0 = arith.constant 0 : i32
    %c0_i32_1 = arith.constant 0 : i32
    return %c0_i32, %c0_i32_0 : i32, i32
  }
  func.func @transform_4(%arg0: i32) -> (i32, i32, i32) {
    %c0_i32 = arith.constant 0 : i32
    %c0_i32_0 = arith.constant 0 : i32
    %c0_i32_1 = arith.constant 0 : i32
    %c0_i32_2 = arith.constant 0 : i32
    return %c0_i32, %c0_i32_0, %c0_i32_1 : i32, i32, i32
  }
  func.func @transform_5(%arg0: i32) -> (i32, i32, i32) {
    %c0_i32 = arith.constant 0 : i32
    %c0_i32_0 = arith.constant 0 : i32
    %c0_i32_1 = arith.constant 0 : i32
    %c0_i32_2 = arith.constant 0 : i32
    return %c0_i32, %c0_i32_0, %c0_i32_1 : i32, i32, i32
  }
  func.func @transform_6(%arg0: i32) -> (i32, i32) {
    %c0_i32 = arith.constant 0 : i32
    %c0_i32_0 = arith.constant 0 : i32
    %c0_i32_1 = arith.constant 0 : i32
    return %c0_i32, %c0_i32_0 : i32, i32
  }
  func.func @transform_7(%arg0: i32) -> (i32, i32) {
    %c0_i32 = arith.constant 0 : i32
    %c0_i32_0 = arith.constant 0 : i32
    %c0_i32_1 = arith.constant 0 : i32
    return %c0_i32, %c0_i32_0 : i32, i32
  }
  func.func @transform_8(%arg0: i32) -> (i32, i32) {
    %c0_i32 = arith.constant 0 : i32
    %c0_i32_0 = arith.constant 0 : i32
    return %arg0, %c0_i32 : i32, i32
  }
}

</mosaic_0001>

<bundles_post_ra>
// kernel: sentiment_rnn_forward.1
= control target key start
LH: loop header
LB: loop body
LE: loop exit
PB: predicated region body
PF: predicated region fallthrough
CT: control target
= control target key end

     0   :  { %v38_v0 = vlaneseq  ;;  %v996_v1 = vmov 0   ;;  %v997_v38 = vmov 1.0   ;;  %vm236_vm11 = vcmask 261120   ;;  %s1159_s12 = smov 0   ;;  %s1265_s0 = inlined_call_operand.vmem [shape: s32[64,1], index: 0, kind: input, shape index: {}]   ;;  %s1266_s1 = inlined_call_operand.vmem [shape: f32[128,32], index: 1, kind: input, shape index: {}]   ;;  %s1267_s3 = inlined_call_operand.vmem [shape: bf16[32,128], index: 3, kind: input, shape index: {}]   ;;  %s1268_s4 = inlined_call_operand.vmem [shape: bf16[1,64,128], index: 4, kind: input, shape index: {}]   ;;  %s1269_s6 = inlined_call_operand.vmem [shape: bf16[32,128], index: 6, kind: input, shape index: {}]   ;;  %s1270_s7 = inlined_call_operand.vmem [shape: f32[1,128], index: 7, kind: input, shape index: {}]   ;;  %s1271_s8 = inlined_call_operand.vmem [shape: f32[8,128], index: 8, kind: output, shape index: {}]   ;;  %s1272_s2 = inlined_call_operand.vmem [shape: bf16[32,128], index: 2, kind: input, shape index: {}]   ;;  %s1273_s5 = inlined_call_operand.vmem [shape: f32[2,1,128], index: 5, kind: input, shape index: {}]  }
   0x1   :  { %929 = vset.pattern.permute.xlu1 %v996_v1  ;;  %928 = vset.pattern.permute.xlu0 %v996_v1  ;;  %v32_v2 = vld [vmem:[%s1265_s0 + $0x10] sm:$0xff]  ;;  %v30_v3 = vld [vmem:[%s1265_s0] sm:$0xff]  ;;  %v33_v4 = vld [vmem:[%s1265_s0 + $0x18] sm:$0xff] }
   0x2   :  { %47 = vperm.xlu1 %929, %v32_v2   ;;  %41 = vperm.xlu0 %928, %v30_v3   ;;  %v31_v5 = vld [vmem:[%s1265_s0 + $0x8] sm:$0xff]  ;;  %v88_v6 = vld [vmem:[%s1266_s1] sm:$0xff]  ;;  %v1065_v7 = vand.u32 127, %v38_v0  ;;  %v90_v9 = vld [vmem:[%s1266_s1 + $0x10] sm:$0xff] }
   0x3   :  { %v89_v8 = vld [vmem:[%s1266_s1 + $0x8] sm:$0xff]  ;;  %v91_v10 = vld [vmem:[%s1266_s1 + $0x18] sm:$0xff]  ;;  %v92_v13 = vld [vmem:[%s1266_s1 + $0x20] sm:$0xff] }
   0x4   :  { %v847_v11 = vpack.c.bf16 %v89_v8, %v88_v6  ;;  %v851_v12 = vpack.c.bf16 %v91_v10, %v90_v9  ;;  %vm322_vm0 = vcmp.ge.s32.totalorder %v1065_v7, 64  ;;  %vm323_vm1 = vcmp.lt.s32.totalorder %v1065_v7, 96  ;;  %v93_v14 = vld [vmem:[%s1266_s1 + $0x28] sm:$0xff]  ;;  %v34_v16 = vld [vmem:[%s1265_s0 + $0x20] sm:$0xff]  ;;  %v94_v19 = vld [vmem:[%s1266_s1 + $0x30] sm:$0xff] }
   0x5   :  { %v35_v15 = vld [vmem:[%s1265_s0 + $0x28] sm:$0xff]  ;;  %vm1090_vm2 = vmand %vm322_vm0, %vm323_vm1  ;;  %v855_v18 = vpack.c.bf16 %v93_v14, %v92_v13  ;;  %v95_v20 = vld [vmem:[%s1266_s1 + $0x38] sm:$0xff]  ;;  %v1153_v13 = vmov 0.0   ;;  %v1155_v14 = vmov 0.0  }
   0x6   :  { %50 = vperm.xlu1 %929, %v33_v4   ;;  %44 = vperm.xlu0 %928, %v31_v5   ;;  %v37_v21 = vld [vmem:[%s1265_s0 + $0x38] sm:$0xff]  ;;  %v36_v22 = vld [vmem:[%s1265_s0 + $0x30] sm:$0xff]  ;;  %v859_v23 = vpack.c.bf16 %v95_v20, %v94_v19  ;;  %v96_v24 = vld [vmem:[%s1266_s1 + $0x40] sm:$0xff] }
   0x7   :  { %848 = vmatprep.subr.bf16.mxu0 %v847_v11  ;;  %v97_v25 = vld [vmem:[%s1266_s1 + $0x48] sm:$0xff]  ;;  %v98_v27 = vld [vmem:[%s1266_s1 + $0x50] sm:$0xff]  ;;  %v99_v28 = vld [vmem:[%s1266_s1 + $0x58] sm:$0xff] }
   0x8   :  { %850 = vmatpush3.bf16.msra.mxu0 %v847_v11  ;;  %v863_v26 = vpack.c.bf16 %v97_v25, %v96_v24  ;;  %v867_v29 = vpack.c.bf16 %v99_v28, %v98_v27  ;;  %v100_v30 = vld [vmem:[%s1266_s1 + $0x60] sm:$0xff]  ;;  %v101_v31 = vld [vmem:[%s1266_s1 + $0x68] sm:$0xff]  ;;  %v102_v33 = vld [vmem:[%s1266_s1 + $0x70] sm:$0xff] }
   0x9   :  { %852 = vmatprep.subr.bf16.mxu0 %v851_v12  ;;  %v871_v32 = vpack.c.bf16 %v101_v31, %v100_v30  ;;  %v103_v34 = vld [vmem:[%s1266_s1 + $0x78] sm:$0xff]  ;;  %v930_v45 = vld [vmem:[%s1272_s2] sm:$0xff]   ;;  %v931_v46 = vld [vmem:[%s1272_s2 + $0x8] sm:$0xff]  }
   0xa   :  { %56 = vperm.xlu1 %929, %v35_v15   ;;  %53 = vperm.xlu0 %928, %v34_v16   ;;  %v875_v35 = vpack.c.bf16 %v103_v34, %v102_v33  ;;  %v693_v59 = vld [vmem:[%s1273_s5] ss:$0 sm:$0xff]  ;;  %v1157_v15 = vmov 0.0  }
   0xb   :  { %807 = vmatprep.subr.bf16.mxu1 %v930_v45 }
   0xc   :  { %854 = vmatpush3.bf16.msra.mxu0 %v851_v12  ;;  %808 = vmatpush3.bf16.msra.mxu1 %v930_v45  ;;  %v1151_v12 = vmov 0.0  }
   0xd   :  { %856 = vmatprep.subr.bf16.mxu0 %v855_v18  ;;  %809 = vmatprep.subr.bf16.mxu1 %v931_v46 }
   0xe   :  { %62 = vperm.xlu1 %929, %v37_v21   ;;  %59 = vperm.xlu0 %928, %v36_v22  }
  0x10   :  { %858 = vmatpush3.bf16.msra.mxu0 %v855_v18  ;;  %810 = vmatpush3.bf16.msra.mxu1 %v931_v46 }
  0x11   :  { %860 = vmatprep.subr.bf16.mxu0 %v859_v23 }
  0x14   :  { %862 = vmatpush3.bf16.msra.mxu0 %v859_v23 }
  0x15   :  { %864 = vmatprep.subr.bf16.mxu0 %v863_v26 }
  0x18   :  { %866 = vmatpush3.bf16.msra.mxu0 %v863_v26 }
  0x19   :  { %868 = vmatprep.subr.bf16.mxu0 %v867_v29 }
  0x1c   :  { %870 = vmatpush3.bf16.msra.mxu0 %v867_v29 }
  0x1d   :  { %872 = vmatprep.subr.bf16.mxu0 %v871_v32 }
  0x20   :  { %874 = vmatpush3.bf16.msra.mxu0 %v871_v32 }
  0x21   :  { %876 = vmatprep.subr.bf16.mxu0 %v875_v35 }
  0x24   :  { %878 = vmatpush3.bf16.msra.mxu0 %v875_v35 }
  0x81   :  { %v48_v36 = vpop.permute.xlu1 %47  ;;  %v42_v37 = vpop.permute.xlu0 %41 }
  0x82   :  { %vm64_vm3 = vcmp.eq.s32.totalorder %v1065_v7, %v42_v37  ;;  %vm66_vm4 = vcmp.eq.s32.totalorder %v1065_v7, %v48_v36 }
  0x83   :  { %795 = vmatprep.mubr.msk.f32.mxu0 %vm64_vm3, %v997_v38 }
  0x85   :  { %v51_v39 = vpop.permute.xlu1 %50  ;;  %v45_v40 = vpop.permute.xlu0 %44 }
  0x86   :  { %vm65_vm5 = vcmp.eq.s32.totalorder %v1065_v7, %v45_v40  ;;  %vm67_vm6 = vcmp.eq.s32.totalorder %v1065_v7, %v51_v39 }
  0x87   :  { %796 = vmatmul.mubr.msk.f32.vlgmr.msra.gmra.mrb[0].mxu0 %vm65_vm5, %v997_v38 }
  0x88   :  { %798 = vmatprep.mubr.msk.f32.mxu0 %vm66_vm4, %v997_v38 }
  0x89   :  { %v57_v41 = vpop.permute.xlu1 %56  ;;  %v54_v42 = vpop.permute.xlu0 %53 }
  0x8a   :  { %vm68_vm7 = vcmp.eq.s32.totalorder %v1065_v7, %v54_v42  ;;  %vm69_vm8 = vcmp.eq.s32.totalorder %v1065_v7, %v57_v41 }
  0x8b   :  { %799 = vmatmul.mubr.msk.f32.gmra.mrb[2].mxu0 %vm67_vm6, %v997_v38 }
  0x8c   :  { %801 = vmatprep.mubr.msk.f32.mxu0 %vm68_vm7, %v997_v38 }
  0x8d   :  { %v60_v43 = vpop.permute.xlu0 %59  ;;  %v63_v44 = vpop.permute.xlu1 %62 }
  0x8e   :  { %vm70_vm9 = vcmp.eq.s32.totalorder %v1065_v7, %v60_v43  ;;  %vm71_vm10 = vcmp.eq.s32.totalorder %v1065_v7, %v63_v44 }
  0x8f   :  { %802 = vmatmul.mubr.msk.f32.gmra.mrb[4].mxu0 %vm69_vm8, %v997_v38 }
  0x90   :  { %804 = vmatprep.mubr.msk.f32.mxu0 %vm70_vm9, %v997_v38 }
  0x93   :  { %805 = vmatmul.mubr.msk.f32.gmra.mrb[6].mxu0 %vm71_vm10, %v997_v38 }
 0x15a   :  { %v797_v47 = vpop.f32.mrb[0].mxu0 }
 0x15b   :  { %v170_v48 = vpop.f32.mrb[1].mxu0 }
 0x15c   :  { %v209_v49 = vpack.c.bf16 %v797_v47, %v170_v48 }
 0x15e   :  { %v800_v50 = vpop.f32.mrb[2].mxu0  ;;  %811 = vmatprep.mubr.msk.bf16.mxu1 %vm236_vm11, %v209_v49 }
 0x15f   :  { %v180_v51 = vpop.f32.mrb[3].mxu0 }
 0x160   :  { %v210_v52 = vpack.c.bf16 %v800_v50, %v180_v51 }
 0x162   :  { %v803_v53 = vpop.f32.mrb[4].mxu0  ;;  %812 = vmatmul.mubr.msk.bf16.vlgmr.msra.gmra.mrb[0].mxu1 %vm236_vm11, %v210_v52 }
 0x163   :  { %v190_v54 = vpop.f32.mrb[5].mxu0 }
 0x164   :  { %v211_v55 = vpack.c.bf16 %v803_v53, %v190_v54 }
 0x166   :  { %v806_v56 = vpop.f32.mrb[6].mxu0  ;;  %815 = vmatprep.mubr.msk.bf16.mxu1 %vm236_vm11, %v211_v55 }
 0x167   :  { %v200_v57 = vpop.f32.mrb[7].mxu0 }
 0x168   :  { %v212_v58 = vpack.c.bf16 %v806_v56, %v200_v57 }
 0x16a   :  { %816 = vmatmul.mubr.msk.bf16.gmra.mrb[4].mxu1 %vm236_vm11, %v212_v58 }
 0x235   :  { %v813_v60 = vpop.f32.mrb[0].mxu1 }
 0x236   :  { %v292_v61 = vadd.f32 %v813_v60, %v693_v59  ;;  %v283_v62 = vpop.f32.mrb[1].mxu1 }
 0x237   :  { %v284_v63 = vadd.f32 %v693_v59, %v283_v62  ;;  %v814_v0 = vpop.f32.mrb[2].mxu1 }
 0x238   :  { %316 = vst [vmem:[#allocation2 + $0x10] sm:$0xff] %v292_v61  ;;  %v295_v1 = vadd.f32 %v814_v0, %v693_v59  ;;  %v286_v2 = vpop.f32.mrb[3].mxu1 }
 0x239   :  { %314 = vst [vmem:[#allocation2] sm:$0xff] %v284_v63  ;;  %v287_v3 = vadd.f32 %v693_v59, %v286_v2 }
 0x23a   :  { %317 = vst [vmem:[#allocation2 + $0x18] sm:$0xff] %v295_v1 }
 0x23b   :  { %315 = vst [vmem:[#allocation2 + $0x8] sm:$0xff] %v287_v3 }
 0x23d   :  { %v817_v4 = vpop.f32.mrb[4].mxu1 }
 0x23e   :  { %v308_v5 = vadd.f32 %v817_v4, %v693_v59  ;;  %v299_v6 = vpop.f32.mrb[5].mxu1 }
 0x23f   :  { %v300_v7 = vadd.f32 %v693_v59, %v299_v6  ;;  %v818_v8 = vpop.f32.mrb[6].mxu1 }
 0x240   :  { %320 = vst [vmem:[#allocation2 + $0x30] sm:$0xff] %v308_v5  ;;  %v311_v9 = vadd.f32 %v818_v8, %v693_v59  ;;  %v302_v10 = vpop.f32.mrb[7].mxu1 }
 0x241   :  { %318 = vst [vmem:[#allocation2 + $0x20] sm:$0xff] %v300_v7  ;;  %v303_v11 = vadd.f32 %v693_v59, %v302_v10 }
 0x242   :  { %321 = vst [vmem:[#allocation2 + $0x38] sm:$0xff] %v311_v9 }
 0x243   :  { %319 = vst [vmem:[#allocation2 + $0x28] sm:$0xff] %v303_v11 }
 0x244 LB: > { %v932_v16 = vld [vmem:[%s1268_s4] sm:$0xff]   ;;  %v998_v18 = vmov 0.0   ;;  %s999_s15 = smov 32   ;;  %v340_v19 = vpack.c.bf16 %v990_v15, %v990_v15  ;;  %v934_v21 = vld [vmem:[%s1268_s4 + $0x8] sm:$0xff]   ;;  %vm1000_vm12 = vmmov 0   ;;  %s1001_s21 = smov 64   ;;  %s994_s12 = sphi %s1159_s12, %s330_s12   ;;  %v990_v15 = vphi %v1157_v15, %v439_v15   ;;  %v986_v14 = vphi %v1155_v14, %v1278_v14   ;;  %v982_v13 = vphi %v1153_v13, %v440_v13   ;;  %v978_v12 = vphi %v1151_v12, %v572_v12  }
 0x245   : > { %827 = vmatprep.subr.bf16.mxu1 %v998_v18  ;;  %819 = vmatprep.subr.bf16.mxu0 %v998_v18  ;;  %v933_v20 = vld [vmem:[%s1267_s3] sm:$0xff]   ;;  %v935_v22 = vld [vmem:[%s1267_s3 + $0x8] sm:$0xff]   ;;  %v936_v23 = vld [vmem:[%s1268_s4 + $0x10] sm:$0xff]   ;;  %vm492_vm13 = vcmask 523264   ;;  %p335_p0 = scmp.lt.s32.totalorder %s994_s12, 7  ;;  %p432_p1 = scmp.ge.s32.totalorder %s994_s12, 0 }
 0x246   : > { %443 = vrot.lane.b32.xlu0 %v990_v15, %s999_s15  ;;  %828 = vmatpush3.bf16.msra.mxu1 %v932_v16  ;;  %v937_v24 = vld [vmem:[%s1268_s4 + $0x18] sm:$0xff]   ;;  %v709_v37 = vld [vmem:[%s1273_s5 + $0x1] ss:$0 sm:$0xff]  ;;  %p433_p2 = scmp.lt.s32.totalorder %s994_s12, 8  ;;  %s707_s30 = sadd.s32 4294967295, %s994_s12 }
 0x247   : > { %829 = vmatprep.subr.bf16.mxu1 %v998_v18  ;;  %823 = vmatprep.mubr.msk.bf16.mxu0 %vm1000_vm12, %v998_v18  ;;  %s336_s26 = scalar_select %p335_p0, %s994_s12, 7 }
 0x248   : > { %346 = vrot.lane.b32.xlu1 %v340_v19, %s999_s15  ;;  %820 = vmatpush3.bf16.msra.mxu0 %v933_v20  ;;  %p434_p3 = pnand %p433_p2, %p432_p1  ;;  %p564_p4 = scmp.ge.s32.totalorder %s707_s30, 0 }
 0x249   : > { %821 = vmatprep.subr.bf16.mxu0 %v998_v18  ;;  %835 = vmatprep.mubr.msk.bf16.mxu1 %vm1000_vm12, %v998_v18  ;;  %s700_s27 = sshll.u32 %s336_s26, 3  ;;  %p565_p5 = scmp.lt.s32.totalorder %s707_s30, 8 }
 0x24a   : > { %447 = vrot.lane.b32.xlu0 %v986_v14, %s1001_s21  ;;  %830 = vmatpush3.bf16.msra.mxu1 %v934_v21  ;;  %s338_s28 = scalar_lea.vmem [#allocation2], %s700_s27  ;;  %s330_s12 = sadd.s32 1, %s994_s12  }
 0x24b   : > { %831 = vmatprep.subr.bf16.mxu1 %v998_v18  ;;  %v339_v30 = vld [vmem:[%s338_s28] sm:$0xff]  ;;  %s706_s9 = scalar_select %p434_p3, 0, 1 }
 0x24c   : > { %822 = vmatpush3.bf16.msra.mxu0 %v935_v22  ;;  %p566_p6 = pnand %p565_p5, %p564_p4  ;;  %p327_p7 = scmp.ge.s32.totalorder %s330_s12, 9  }
 0x24d   : > { %v437_v0 = vstv %s706_s9  ;;  %v1002_v22 = vmov (%p327_p7), 0.0   ;;  %s1003_s13 = smov (%p327_p7), 32   ;;  %vm1004_vm0 = vmmov (%p327_p7), 0   ;;  %v718_v17 = vld [vmem:[%s1270_s7] ss:$0 sm:$0xff] (%p327_p7) }
 0x24e   : > { %832 = vmatpush3.bf16.msra.mxu1 %v936_v23  ;;  %s717_s10 = scalar_select %p566_p6, 0, 1  ;;  %vm438_vm14 = vcmp.eq.s32.totalorder %v437_v0, 1 }
 0x24f   : > { %833 = vmatprep.subr.bf16.mxu1 %v998_v18  ;;  %839 = vmatprep.subr.bf16.mxu0 (%p327_p7), %v1002_v22  ;;  %v950_v23 = vld [vmem:[%s1269_s6] sm:$0xff] (%p327_p7)  }
 0x250   : > { %v569_v4 = vstv %s717_s10 }
 0x251   : > { %vm1227_vm15 = vcmp.eq.s32.totalorder %v569_v4, 1 }
 0x252   : > { %834 = vmatpush3.bf16.msra.mxu1 %v937_v24  ;;  %v951_v24 = vld [vmem:[%s1269_s6 + $0x8] sm:$0xff] (%p327_p7)  }
 0x2b8   : > { %v444_v25 = vpop.permute.xlu0 %443 }
 0x2ba   : > { %v347_v26 = vpop.permute.xlu1 %346 }
 0x2bb   : > { %824 = vmatmul.mubr.msk.bf16.vlgmr.msra.gmra.mrb[0].mxu0 %vm236_vm11, %v347_v26 }
 0x2bc   : > { %v448_v27 = vpop.permute.xlu0 %447  ;;  %843 = vmatprep.mubr.msk.bf16.mxu0 (%p327_p7), %vm1004_vm0, %v1002_v22  ;;  %840 = vmatpush3.bf16.msra.mxu0 (%p327_p7), %v950_v23 }
 0x2bd   : > { %v450_v28 = vsel %vm236_vm11, %v444_v25, %v448_v27  ;;  %841 = vmatprep.subr.bf16.mxu0 (%p327_p7), %v1002_v22 }
 0x2be   : > { %v451_v29 = vpack.c.bf16 %v450_v28, %v450_v28 }
 0x2c0   : > { %836 = vmatmul.mubr.msk.bf16.vlgmr.msra.gmra.mrb[0].mxu1 %vm492_vm13, %v451_v29  ;;  %842 = vmatpush3.bf16.msra.mxu0 (%p327_p7), %v951_v24 }
 0x38e   : > { %v397_v31 = vpop.f32.mrb[0].mxu0 }
 0x38f   : > { %v403_v32 = vadd.f32 %v397_v31, %v339_v30  ;;  %v825_v33 = vpop.f32.mrb[1].mxu0 }
 0x390   : > { %v400_v34 = vpop.f32.mrb[2].mxu0 }
 0x391   : > { %v404_v35 = vmul.f32 2.0, %v403_v32  ;;  %v826_v36 = vpop.f32.mrb[3].mxu0 }
 0x393   : > { %v405_v38 = vsel %vm1090_vm2, %v404_v35, %v403_v32  ;;  %v530_v39 = vpop.f32.mrb[0].mxu1 }
 0x394   : > { %v704_v40 = vmul.f32 -1.442695, %v405_v38  ;;  %v531_v41 = vadd.f32 %v709_v37, %v530_v39  ;;  %v837_v42 = vpop.f32.mrb[1].mxu1 }
 0x395   : > { %v533_v43 = vpop.f32.mrb[2].mxu1 }
 0x396   : > { %938 = vpow2.f32 %v704_v40  ;;  %v536_v44 = vmul.f32 2.0, %v531_v41  ;;  %v838_v45 = vpop.f32.mrb[3].mxu1 }
 0x398   : > { %v537_v46 = vsel %vm1090_vm2, %v536_v44, %v531_v41 }
 0x399   : > { %v715_v47 = vmul.f32 -1.442695, %v537_v46 }
 0x39b   : > { %940 = vpow2.f32 %v715_v47 }
 0x3a0   : > { %v939_v48 = vpop.eup %938 }
 0x3a1   : > { %v409_v49 = vadd.f32 1.0, %v939_v48 }
 0x3a3   : > { %942 = vrcp.f32 %v409_v49 }
 0x3a5   : > { %v941_v50 = vpop.eup %940 }
 0x3a6   : > { %v541_v51 = vadd.f32 1.0, %v941_v50 }
 0x3a8   : > { %944 = vrcp.f32 %v541_v51 }
 0x3ad   : > { %v943_v52 = vpop.eup %942 }
 0x3ae   : > { %v412_v53 = vmul.f32 2.0, %v943_v52 }
 0x3b0   : > { %v705_v54 = vadd.f32 -1.0, %v412_v53 }
 0x3b2   : > { %v945_v55 = vpop.eup %944  ;;  %v414_v56 = vsel %vm1090_vm2, %v705_v54, %v943_v52 }
 0x3b3   : > { %417 = vrot.lane.b32.xlu1 %v414_v56, %s1001_s21  ;;  %v544_v57 = vmul.f32 2.0, %v945_v55  ;;  %v415_v1 = vmul.f32 %v982_v13, %v414_v56 }
 0x3b5   : > { %v716_v58 = vadd.f32 -1.0, %v544_v57 }
 0x3b7   : > { %v546_v59 = vsel %vm1090_vm2, %v716_v58, %v945_v55 }
 0x3b8   : > { %549 = vrot.lane.b32.xlu0 %v546_v59, %s1001_s21  ;;  %v547_v5 = vmul.f32 %v978_v12, %v546_v59 }
 0x425   : > { %v418_v60 = vpop.permute.xlu1 %417 }
 0x426   : > { %v420_v61 = vmul.f32 %v418_v60, %v414_v56 }
 0x428   : > { %422 = vrot.lane.b32.xlu1 %v420_v61, %s999_s15 }
 0x42a   : > { %v550_v62 = vpop.permute.xlu0 %549 }
 0x42b   : > { %v552_v63 = vmul.f32 %v550_v62, %v546_v59 }
 0x42d   : > { %554 = vrot.lane.b32.xlu0 %v552_v63, %s999_s15 }
 0x49a   : > { %v423_v2 = vpop.permute.xlu1 %422 }
 0x49b   : > { %v425_v3 = vadd.f32 %v423_v2, %v415_v1 }
 0x49d   : > { %946 = vtanh.f32 %v425_v3  ;;  %v440_v13 = vsel %vm438_vm14, %v425_v3, %v982_v13  }
 0x49f   : > { %v555_v7 = vpop.permute.xlu0 %554 }
 0x4a0   : > { %v557_v8 = vadd.f32 %v555_v7, %v547_v5 }
 0x4a2   : > { %948 = vtanh.f32 %v557_v8  ;;  %v572_v12 = vsel %vm1227_vm15, %v557_v8, %v978_v12  }
 0x4a7   : > { %v947_v9 = vpop.eup %946 }
 0x4a8   : > { %428 = vrot.lane.b32.xlu1 %v947_v9, %s1001_s21 }
 0x4ac   : > { %v949_v10 = vpop.eup %948 }
 0x4ad   : > { %560 = vrot.lane.b32.xlu0 %v949_v10, %s1001_s21 }
 0x51a   : > { %v429_v11 = vpop.permute.xlu1 %428 }
 0x51b   : > { %v431_v16 = vmul.f32 %v429_v11, %v414_v56 }
 0x51d   : > { %v439_v15 = vsel %vm438_vm14, %v431_v16, %v990_v15   ;;  %329 = sbr.rel (!%p327_p7) target bundleno = 580 (0x244), region = 61 }
 0x51f   : > { %v561_v18 = vpop.permute.xlu0 %560 }
 0x520   : > { %v563_v19 = vmul.f32 %v561_v18, %v546_v59 }
 0x522   : > { %v571_v20 = vsel %vm1227_vm15, %v563_v19, %v986_v14  }
 0x523   : > { %v1278_v14 = vmov %v571_v20  ;;  %v573_v21 = vpack.c.bf16 (%p327_p7), %v571_v20, %v571_v20 }
 0x525   :  { %586 = vrot.lane.b32.xlu0 %v573_v21, %s1003_s13 }
 0x597   :  { %v587_v15 = vpop.permute.xlu0 %586 }
 0x598   :  { %844 = vmatmul.mubr.msk.bf16.vlgmr.msra.gmra.mrb[0].mxu0 %vm236_vm11, %v587_v15 }
 0x66b   :  { %v637_v12 = vpop.f32.mrb[0].mxu0 }
 0x66c   :  { %v638_v13 = vadd.f32 %v718_v17, %v637_v12  ;;  %v845_v14 = vpop.f32.mrb[1].mxu0 }
 0x66d   :  { %v640_v25 = vpop.f32.mrb[2].mxu0 }
 0x66e   :  { %643 = vmax.xlane.f32.xlu0 %v638_v13  ;;  %v846_v26 = vpop.f32.mrb[3].mxu0 }
 0x6fb   :  { %v644_v27 = vpop.xlane.xlu0 %643 }
 0x6fc   :  { %v645_v28 = vsub.f32 %v638_v13, %v644_v27 }
 0x6fe   :  { %v646_v29 = vmul.f32 1.442695, %v645_v28 }
 0x700   :  { %952 = vpow2.f32 %v646_v29 }
 0x70a   :  { %v953_v30 = vpop.eup %952 }
 0x70b   :  { %648 = vadd.xlane.f32.xlu1 %v953_v30 }
 0x798   :  { %v649_v31 = vpop.xlane.xlu1 %648 }
 0x799   :  { %954 = vlog2.f32 %v649_v31 }
 0x7a3   :  { %v955_v32 = vpop.eup %954 }
 0x7a4   :  { %v651_v33 = vmul.f32 0.6931472, %v955_v32 }
 0x7a6   :  { %v652_v34 = vsub.f32 %v645_v28, %v651_v33 }
 0x7a8   :  { %653 = vst [vmem:[%s1271_s8] sm:$0xff] %v652_v34 }

</bundles_post_ra>
